<compile_context>
chip_gen: v7x
topology: tpu7x:2x2x1
jax: 0.10.0
libtpu: 0.0.40
codegen_flags: <defaults>
</compile_context>

<pallas_src>
import functools

import jax
import jax.numpy as jnp
from jax.experimental import pallas as pl
from jax.experimental.pallas import tpu as pltpu

PAD_token = 0  # padding index; its embedding row is zero (nn.Embedding padding_idx)


def _round_up(x, m):
    return ((x + m - 1) // m) * m


def encoder_memnn_kernel(counts_ref, emb_ref, out_ref, proj_ref, *,
                         max_hops, tb, m_pad, m_real, e_pad):
    """One (TB*Mp, TV) x (TV, hops*Ep) MXU matmul per step; hops run at the last V tile.

    counts_ref : (TB*Mp, TV)       bf16  bag-of-words counts tile
    emb_ref    : (TV, hops*Ep)     bf16  C_1..C_hops concatenated on E
    out_ref    : (TB, Ep)          f32   u_K for this batch tile
    proj_ref   : (TB*Mp, hops*Ep)  f32   scratch accumulator (counts @ tables)
    """
    v = pl.program_id(1)
    nv = pl.num_programs(1)

    @pl.when(v == 0)
    def _init():
        proj_ref[...] = jnp.zeros_like(proj_ref)

    # Single lane-dense MXU matmul against all needed tables at once (f32 accumulate).
    proj_ref[...] += jnp.dot(counts_ref[...], emb_ref[...],
                             preferred_element_type=jnp.float32)

    @pl.when(v == nv - 1)
    def _hops():
        # tables[h] = counts @ C_{h+1}, reshaped per-batch: (TB, Mp, Ep)
        tables = [proj_ref[:, h * e_pad:(h + 1) * e_pad].reshape(tb, m_pad, e_pad)
                  for h in range(max_hops)]

        # hop 0: u_0 = 0 -> softmax is uniform -> o_0 = mean_m (counts @ C_1)
        u = jnp.sum(tables[0], axis=1) * jnp.float32(1.0 / m_real)       # (TB, Ep)

        if m_pad > m_real:
            slot = jax.lax.broadcasted_iota(jnp.int32, (tb, m_pad), 1)

        for h in range(1, max_hops):
            m_A = tables[h - 1]                                          # C_h proj
            m_C = tables[h]                                              # C_{h+1} proj
            logits = jnp.sum(m_A * u[:, None, :], axis=-1)               # (TB, Mp)
            if m_pad > m_real:
                logits = jnp.where(slot < m_real, logits, jnp.float32(-1e30))
            logits = logits - jnp.max(logits, axis=-1, keepdims=True)
            e_x = jnp.exp(logits)
            denom = jnp.sum(e_x, axis=-1, keepdims=True)
            prob = e_x * pl.reciprocal(denom, approx=True)               # (TB, Mp)
            o_k = jnp.sum(m_C * prob[:, :, None], axis=1)                # (TB, Ep)
            u = u + o_k

        out_ref[...] = u                                                 # lane-dense store


def encoder_memnn_forward(story, embeddings, max_hops, *, batch_tile=8, v_tile=512):
    """story: (M, B, W) int32 tokens; embeddings: (hops+1, V, E) f32 (PAD row zero)."""
    # TODO(synk): the training-time unk_mask dropout on word 0 is stochastic and
    # training-only; this implements the eval forward path.
    story_bt = jnp.transpose(story, (1, 0, 2))              # (B, M, W)
    B, M, W = story_bt.shape
    hp1, V, E = embeddings.shape
    assert hp1 == max_hops + 1

    Ep = _round_up(E, 128)
    Mp = _round_up(M, 8)
    Vp = _round_up(V, 128)
    TV = min(v_tile, Vp)
    Vp = _round_up(Vp, TV)
    TB = batch_tile
    Bp = _round_up(B, TB)

    # Bag-of-words counts per memory slot via scatter-add (no dense one-hot intermediate).
    # PAD tokens are counted but the PAD embedding row is zero, matching padding_idx.
    # TODO(synk): for realistic vocab sizes, replace the dense counts with an in-kernel
    # gather-sum over the W token ids (scalar prefetch + DMA) to avoid O(B*M*V) traffic.
    counts = jnp.zeros((B, M, Vp), jnp.float32)
    counts = counts.at[jnp.arange(B)[:, None, None],
                       jnp.arange(M)[None, :, None],
                       story_bt].add(1.0)
    counts = jnp.pad(counts, ((0, Bp - B), (0, Mp - M), (0, 0)))
    counts2d = counts.reshape(Bp * Mp, Vp).astype(jnp.bfloat16)   # counts <= W -> exact

    # Tables C_1..C_hops (C_0 is only ever dotted with u_0 = 0, so it is never needed),
    # zero-padded on V and E and concatenated on E for a single lane-dense matmul.
    emb_used = jnp.pad(embeddings[1:], ((0, 0), (0, Vp - V), (0, Ep - E)))
    emb2d = jnp.transpose(emb_used, (1, 0, 2)).reshape(Vp, max_hops * Ep)
    emb2d = emb2d.astype(jnp.bfloat16)

    kernel = functools.partial(encoder_memnn_kernel, max_hops=max_hops,
                               tb=TB, m_pad=Mp, m_real=M, e_pad=Ep)
    out = pl.pallas_call(
        kernel,
        out_shape=jax.ShapeDtypeStruct((Bp, Ep), jnp.float32),
        grid=(Bp // TB, Vp // TV),
        in_specs=[
            pl.BlockSpec((TB * Mp, TV), lambda b, v: (b, v)),
            pl.BlockSpec((TV, max_hops * Ep), lambda b, v: (v, 0)),
        ],
        out_specs=pl.BlockSpec((TB, Ep), lambda b, v: (b, 0)),
        scratch_shapes=[pltpu.VMEM((TB * Mp, max_hops * Ep), jnp.float32)],
        compiler_params=pltpu.CompilerParams(
            dimension_semantics=("parallel", "arbitrary")),
    )(counts2d, emb2d)
    return out[:B, :E]


def encoder_memnn_reference(story, embeddings, max_hops):
    """Pure-JAX reference mirroring the PyTorch forward (eval mode), f32 throughout."""
    story_bt = jnp.transpose(story, (1, 0, 2))              # (B, M, W)
    B = story_bt.shape[0]
    E = embeddings.shape[-1]
    u = jnp.zeros((B, E), jnp.float32)
    for hop in range(max_hops):
        embed_A = embeddings[hop][story_bt]                 # (B, M, W, E)
        m_A = embed_A.sum(axis=2)                           # (B, M, E)
        logits = jnp.sum(m_A * u[:, None, :], axis=2)       # (B, M)
        prob = jax.nn.softmax(logits, axis=1)               # (B, M)
        embed_C = embeddings[hop + 1][story_bt]             # (B, M, W, E)
        m_C = embed_C.sum(axis=2)                           # (B, M, E)
        o_k = jnp.sum(m_C * prob[:, :, None], axis=1)       # (B, E)
        u = u + o_k
    return u


if __name__ == "__main__":
    VOCAB = 32
    EMBED = 32
    HOPS = 3
    M, B, W = 8, 2, 4

    key = jax.random.PRNGKey(0)
    k_emb, k_story = jax.random.split(key)

    # C_0 .. C_HOPS ~ Normal(0, 0.1), PAD row zeroed (nn.Embedding padding_idx)
    embeddings = 0.1 * jax.random.normal(k_emb, (HOPS + 1, VOCAB, EMBED), jnp.float32)
    embeddings = embeddings.at[:, PAD_token, :].set(0.0)

    # story tokens (M, B, W) int32 — same layout the PyTorch module receives
    story = jax.random.randint(k_story, (M, B, W), 0, VOCAB, dtype=jnp.int32)

    out = encoder_memnn_forward(story, embeddings, HOPS)
    out = jax.block_until_ready(out)

    ref = encoder_memnn_reference(story, embeddings, HOPS)
    assert out.shape == (B, EMBED)
    # bf16 matmul operands + EUP approx reciprocal -> modest tolerance vs f32 reference
    assert jnp.allclose(out, ref, rtol=1e-2, atol=1e-2), "mismatch vs JAX reference"

    print("KERNEL_OK")
</pallas_src>

<mosaic_0001>
module attributes {stable_mosaic.version = 11 : i64} {
  func.func @encoder_memnn_kernel(%arg0: i32, %arg1: i32, %arg2: memref<64x128xbf16, #tpu.memory_space<vmem>>, %arg3: memref<128x384xbf16, #tpu.memory_space<vmem>>, %arg4: memref<8x128xf32, #tpu.memory_space<vmem>>, %arg5: memref<64x384xf32, #tpu.memory_space<vmem>>) attributes {dimension_semantics = [#tpu.dimension_semantics<parallel>, #tpu.dimension_semantics<arbitrary>], iteration_bounds = array<i64: 1, 1>, scalar_prefetch = 0 : i64, scratch_operands = 1 : i64, tpu.core_type = #tpu.core_type<tc>, window_params = [{transform_indices = @transform_0, window_bounds = array<i64: 64, 128>}, {transform_indices = @transform_1, window_bounds = array<i64: 128, 384>}, {transform_indices = @transform_2, window_bounds = array<i64: 8, 128>}]} {
    %c0_i32 = arith.constant 0 : i32
    %0 = arith.cmpi eq, %arg1, %c0_i32 : i32
    %1 = arith.extui %0 : i1 to i32
    %c0_i32_0 = arith.constant 0 : i32
    %2 = arith.cmpi ne, %1, %c0_i32_0 : i32
    scf.if %2 {
      %cst_10 = arith.constant 0.000000e+00 : f32
      %12 = vector.broadcast %cst_10 : f32 to vector<64x384xf32>
      %c0_11 = arith.constant 0 : index
      %c0_12 = arith.constant 0 : index
      %13 = vector.load %arg5[%c0_11, %c0_12] : memref<64x384xf32, #tpu.memory_space<vmem>>, vector<64x384xf32>
      tpu.vector_store %arg5[%c0_11, %c0_12], %12 {strides = array<i32>} : memref<64x384xf32, #tpu.memory_space<vmem>>, vector<64x384xf32>,
    } else {
    }
    %c0 = arith.constant 0 : index
    %c0_1 = arith.constant 0 : index
    %3 = vector.load %arg5[%c0, %c0_1] : memref<64x384xf32, #tpu.memory_space<vmem>>, vector<64x384xf32>
    %c0_2 = arith.constant 0 : index
    %c0_3 = arith.constant 0 : index
    %4 = vector.load %arg2[%c0_2, %c0_3] : memref<64x128xbf16, #tpu.memory_space<vmem>>, vector<64x128xbf16>
    %c0_4 = arith.constant 0 : index
    %c0_5 = arith.constant 0 : index
    %5 = vector.load %arg3[%c0_4, %c0_5] : memref<128x384xbf16, #tpu.memory_space<vmem>>, vector<128x384xbf16>
    %cst = arith.constant dense<0.000000e+00> : vector<64x384xf32>
    %6 = tpu.matmul %4, %5, %cst {dimension_numbers = #tpu.dot_dimension_numbers<[1], [0], [0], [1], [0, 0, 1, 1], [], []>} : vector<64x128xbf16>, vector<128x384xbf16>, vector<64x384xf32> -> vector<64x384xf32>
    %7 = arith.addf %3, %6 : vector<64x384xf32>
    %c0_6 = arith.constant 0 : index
    %c0_7 = arith.constant 0 : index
    %8 = vector.load %arg5[%c0_6, %c0_7] : memref<64x384xf32, #tpu.memory_space<vmem>>, vector<64x384xf32>
    tpu.vector_store %arg5[%c0_6, %c0_7], %7 {strides = array<i32>} : memref<64x384xf32, #tpu.memory_space<vmem>>, vector<64x384xf32>,
    %c0_i32_8 = arith.constant 0 : i32
    %9 = arith.cmpi eq, %arg1, %c0_i32_8 : i32
    %10 = arith.extui %9 : i1 to i32
    %c0_i32_9 = arith.constant 0 : i32
    %11 = arith.cmpi ne, %10, %c0_i32_9 : i32
    scf.if %11 {
      %c0_10 = arith.constant 0 : index
      %c0_11 = arith.constant 0 : index
      %12 = vector.load %arg5[%c0_10, %c0_11] : memref<64x384xf32, #tpu.memory_space<vmem>>, vector<64x128xf32>
      %13 = vector.shape_cast %12 : vector<64x128xf32> to vector<8x8x128xf32>
      %c0_12 = arith.constant 0 : index
      %c128 = arith.constant 128 : index
      %14 = vector.load %arg5[%c0_12, %c128] : memref<64x384xf32, #tpu.memory_space<vmem>>, vector<64x128xf32>
      %15 = vector.shape_cast %14 : vector<64x128xf32> to vector<8x8x128xf32>
      %c0_13 = arith.constant 0 : index
      %c256 = arith.constant 256 : index
      %16 = vector.load %arg5[%c0_13, %c256] : memref<64x384xf32, #tpu.memory_space<vmem>>, vector<64x128xf32>
      %17 = vector.shape_cast %16 : vector<64x128xf32> to vector<8x8x128xf32>
      %cst_14 = arith.constant dense<0.000000e+00> : vector<8x128xf32>
      %18 = vector.multi_reduction <add>, %13, %cst_14 [1] : vector<8x8x128xf32> to vector<8x128xf32>
      %cst_15 = arith.constant 1.250000e-01 : f32
      %19 = vector.broadcast %cst_15 : f32 to vector<8x128xf32>
      %20 = arith.mulf %18, %19 : vector<8x128xf32>
      %21 = vector.shape_cast %20 : vector<8x128xf32> to vector<8x1x128xf32>
      %22 = vector.broadcast %21 : vector<8x1x128xf32> to vector<8x8x128xf32>
      %23 = arith.mulf %13, %22 : vector<8x8x128xf32>
      %cst_16 = arith.constant dense<0.000000e+00> : vector<8x8xf32>
      %24 = vector.multi_reduction <add>, %23, %cst_16 [2] : vector<8x8x128xf32> to vector<8x8xf32>
      %cst_17 = arith.constant dense<0xFF800000> : vector<8xf32>
      %25 = vector.multi_reduction <maximumf>, %24, %cst_17 [1] : vector<8x8xf32> to vector<8xf32>
      %26 = vector.shape_cast %25 : vector<8xf32> to vector<8x1xf32>
      %27 = vector.broadcast %26 : vector<8x1xf32> to vector<8x8xf32>
      %28 = arith.subf %24, %27 : vector<8x8xf32>
      %29 = math.exp %28 : vector<8x8xf32>
      %cst_18 = arith.constant dense<0.000000e+00> : vector<8xf32>
      %30 = vector.multi_reduction <add>, %29, %cst_18 [1] : vector<8x8xf32> to vector<8xf32>
      %31 = vector.shape_cast %30 : vector<8xf32> to vector<8x1xf32>
      %32 = tpu.reciprocal %31 {approx = true} : vector<8x1xf32> -> vector<8x1xf32>
      %33 = vector.broadcast %32 : vector<8x1xf32> to vector<8x8xf32>
      %34 = arith.mulf %29, %33 : vector<8x8xf32>
      %35 = vector.shape_cast %34 : vector<8x8xf32> to vector<8x8x1xf32>
      %36 = vector.broadcast %35 : vector<8x8x1xf32> to vector<8x8x128xf32>
      %37 = arith.mulf %15, %36 : vector<8x8x128xf32>
      %cst_19 = arith.constant dense<0.000000e+00> : vector<8x128xf32>
      %38 = vector.multi_reduction <add>, %37, %cst_19 [1] : vector<8x8x128xf32> to vector<8x128xf32>
      %39 = arith.addf %20, %38 : vector<8x128xf32>
      %40 = vector.shape_cast %39 : vector<8x128xf32> to vector<8x1x128xf32>
      %41 = vector.broadcast %40 : vector<8x1x128xf32> to vector<8x8x128xf32>
      %42 = arith.mulf %15, %41 : vector<8x8x128xf32>
      %cst_20 = arith.constant dense<0.000000e+00> : vector<8x8xf32>
      %43 = vector.multi_reduction <add>, %42, %cst_20 [2] : vector<8x8x128xf32> to vector<8x8xf32>
      %cst_21 = arith.constant dense<0xFF800000> : vector<8xf32>
      %44 = vector.multi_reduction <maximumf>, %43, %cst_21 [1] : vector<8x8xf32> to vector<8xf32>
      %45 = vector.shape_cast %44 : vector<8xf32> to vector<8x1xf32>
      %46 = vector.broadcast %45 : vector<8x1xf32> to vector<8x8xf32>
      %47 = arith.subf %43, %46 : vector<8x8xf32>
      %48 = math.exp %47 : vector<8x8xf32>
      %cst_22 = arith.constant dense<0.000000e+00> : vector<8xf32>
      %49 = vector.multi_reduction <add>, %48, %cst_22 [1] : vector<8x8xf32> to vector<8xf32>
      %50 = vector.shape_cast %49 : vector<8xf32> to vector<8x1xf32>
      %51 = tpu.reciprocal %50 {approx = true} : vector<8x1xf32> -> vector<8x1xf32>
      %52 = vector.broadcast %51 : vector<8x1xf32> to vector<8x8xf32>
      %53 = arith.mulf %48, %52 : vector<8x8xf32>
      %54 = vector.shape_cast %53 : vector<8x8xf32> to vector<8x8x1xf32>
      %55 = vector.broadcast %54 : vector<8x8x1xf32> to vector<8x8x128xf32>
      %56 = arith.mulf %17, %55 : vector<8x8x128xf32>
      %cst_23 = arith.constant dense<0.000000e+00> : vector<8x128xf32>
      %57 = vector.multi_reduction <add>, %56, %cst_23 [1] : vector<8x8x128xf32> to vector<8x128xf32>
      %58 = arith.addf %39, %57 : vector<8x128xf32>
      %c0_24 = arith.constant 0 : index
      %c0_25 = arith.constant 0 : index
      %59 = vector.load %arg4[%c0_24, %c0_25] : memref<8x128xf32, #tpu.memory_space<vmem>>, vector<8x128xf32>
      tpu.vector_store %arg4[%c0_24, %c0_25], %58 {strides = array<i32>} : memref<8x128xf32, #tpu.memory_space<vmem>>, vector<8x128xf32>,
    } else {
    }
    return
  }
  func.func @transform_0(%arg0: i32, %arg1: i32) -> (i32, i32) {
    %c0_i32 = arith.constant 0 : i32
    return %arg0, %arg1 : i32, i32
  }
  func.func @transform_1(%arg0: i32, %arg1: i32) -> (i32, i32) {
    %c0_i32 = arith.constant 0 : i32
    %c0_i32_0 = arith.constant 0 : i32
    return %arg1, %c0_i32 : i32, i32
  }
  func.func @transform_2(%arg0: i32, %arg1: i32) -> (i32, i32) {
    %c0_i32 = arith.constant 0 : i32
    %c0_i32_0 = arith.constant 0 : i32
    return %arg0, %c0_i32 : i32, i32
  }
}

</mosaic_0001>

<bundles_post_ra>
// kernel: tpu_custom_call.1
= control target key start
LH: loop header
LB: loop body
LE: loop exit
PB: predicated region body
PF: predicated region fallthrough
CT: control target
= control target key end

     0   :  { %7 = vsyncpa [#allocation4], 0  ;;  %s1873_s0 = inlined_call_operand.hbm [shape: bf16[64,128], index: 0, kind: input, shape index: {}]   ;;  %s1874_s1 = inlined_call_operand.hbm [shape: bf16[128,384], index: 1, kind: input, shape index: {}]   ;;  %s1875_s2 = inlined_call_operand.hbm [shape: f32[8,128], index: 2, kind: output, shape index: {}]  }
   0x1   :  { %8 = vsyncpa [#allocation7], 0 }
   0x2   :  { %9 = vsyncpa [#allocation5], 0  ;;  %s1553_s9 = smov [#allocation3]   ;;  %s1481_s13 = scalar_lea.hbm %s1873_s0, 512 }
   0x3   :  { %s15_s10 = sshll.u32 %s1553_s9, 4  ;;  %p1482_p0 = scmp.ne.s32.totalorder %s1873_s0, %s1481_s13  ;;  %s16_s10 = int_to_ptr.vmem [resolvable:$true] %s15_s10 }
   0x4   :  { %p1485_p1 = scmp.lt.u32.totalorder %s1481_s13, %s1873_s0 }
   0x6   :  { %p1487_p2 = pnand %p1485_p1, %p1482_p0 }
   0x8   :  { %1490 = shalt.err (!%p1487_p2)
}
   0x9   :  { %s1491_s18 = scalar_lea.vmem %s16_s10, 512  ;;  %p1496_p4 = scmp.lt.s32.totalorder %s16_s10, %s16_s10 }
   0xa   :  { %p1492_p3 = scmp.ne.s32.totalorder %s16_s10, %s1491_s18  ;;  %p1497_p5 = scmp.lt.s32.totalorder %s1491_s18, %s1491_s18 }
   0xc   :  { %p1498_p6 = por %p1497_p5, %p1496_p4 }
   0xe   :  { %p1499_p7 = pnand %p1498_p6, %p1492_p3 }
  0x10   :  { %1502 = shalt.err (!%p1499_p7)
}
  0x11   :  { %s1554_s19 = smov 64   ;;  %s1555_s20 = smov 4  }
  0x12   :  { %21 = dma.hbm_to_vmem [thread:$0]  %s1873_s0, 512, %s16_s10, [#allocation4], %s1554_s19, %s1554_s19, %s1555_s20  }
  0x13   :  { %s1556_s23 = smov [#allocation6]   ;;  %s1503_s27 = scalar_lea.hbm %s1874_s1, 3072 }
  0x14   :  { %s27_s24 = sshll.u32 %s1556_s23, 4  ;;  %p1504_p8 = scmp.ne.s32.totalorder %s1874_s1, %s1503_s27  ;;  %s28_s24 = int_to_ptr.vmem [resolvable:$true] %s27_s24 }
  0x15   :  { %p1507_p9 = scmp.lt.u32.totalorder %s1503_s27, %s1874_s1 }
  0x17   :  { %p1509_p10 = pnand %p1507_p9, %p1504_p8 }
  0x19   :  { %1512 = shalt.err (!%p1509_p10)
}
  0x1a   :  { %s1513_s4 = scalar_lea.vmem %s28_s24, 3072  ;;  %p1518_p12 = scmp.lt.s32.totalorder %s28_s24, %s28_s24 }
  0x1b   :  { %p1514_p11 = scmp.ne.s32.totalorder %s28_s24, %s1513_s4  ;;  %p1519_p13 = scmp.lt.s32.totalorder %s1513_s4, %s1513_s4 }
  0x1d   :  { %p1520_p0 = por %p1519_p13, %p1518_p12 }
  0x1f   :  { %p1521_p1 = pnand %p1520_p0, %p1514_p11 }
  0x21   :  { %1524 = shalt.err (!%p1521_p1)
}
  0x22   :  { %s1557_s0 = smov 192   ;;  %s1558_s5 = smov 12  }
  0x23   :  { %33 = dma.hbm_to_vmem [thread:$0]  %s1874_s1, 3072, %s28_s24, [#allocation7], %s1557_s0, %s1557_s0, %s1558_s5  }
  0x24   :  { %1547 = dma.done.wait [#allocation4], 512  }
  0x25   :  { %1548 = vsyncadd [#allocation4], 4294966784 }
  0x26   :  { %1549 = dma.done.wait [#allocation7], 3072  }
  0x27   :  { %1550 = vsyncadd [#allocation7], 4294964224  ;;  %v1559_v0 = vmov 0   ;;  %v1409_v1 = vld [vmem:[#allocation6 + $0x4] ss:$12 sps:$4 sm:$0xff]   ;;  %v1600_v18 = vld [vmem:[#allocation3 + $0x8] sm:$0xff]  }
  0x28   :  { %317 = vmatprep.mubr.bf16.mxu0 %v1559_v0  ;;  %1408 = vset.pattern.permute.xlu0 %v1559_v0  ;;  %v1411_v2 = vld [vmem:[#allocation6] ss:$12 sps:$4 sm:$0xff]   ;;  %v1412_v3 = vld [vmem:[#allocation6 + $0x1c] ss:$12 sps:$4 sm:$0xff]   ;;  %v1414_v4 = vld [vmem:[#allocation6 + $0x18] ss:$12 sps:$4 sm:$0xff]  }
  0x29   :  { %1407 = vset.pattern.permute.xlu1 %v1559_v0  ;;  %285 = vmatprep.subr.bf16.mxu0 %v1409_v1  ;;  %v1415_v5 = vld [vmem:[#allocation6 + $0x34] ss:$12 sps:$4 sm:$0xff]   ;;  %v1417_v6 = vld [vmem:[#allocation6 + $0x30] ss:$12 sps:$4 sm:$0xff]   ;;  %v1418_v7 = vld [vmem:[#allocation6 + $0x4c] ss:$12 sps:$4 sm:$0xff]  }
  0x2a   :  { %286 = vmatpush1.bf16.msra.mxu0 %v1411_v2  ;;  %v1420_v8 = vld [vmem:[#allocation6 + $0x48] ss:$12 sps:$4 sm:$0xff]   ;;  %v1433_v9 = vld [vmem:[#allocation3] sm:$0xff]   ;;  %v1429_v15 = vld [vmem:[#allocation6 + $0x90] ss:$12 sps:$4 sm:$0xff]   ;;  %vm620_vm0 = vcmask 1041409  }
  0x2b   :  { %287 = vmatprep.subr.bf16.mxu0 %v1412_v3  ;;  %v1421_v10 = vld [vmem:[#allocation6 + $0x64] ss:$12 sps:$4 sm:$0xff]   ;;  %v1423_v11 = vld [vmem:[#allocation6 + $0x60] ss:$12 sps:$4 sm:$0xff]   ;;  %1391 = vmatprep.mubr.bf16.mxu1 %v1433_v9  ;;  %v1424_v12 = vld [vmem:[#allocation6 + $0x7c] ss:$12 sps:$4 sm:$0xff]  }
  0x2c   :  { %v1426_v13 = vld [vmem:[#allocation6 + $0x78] ss:$12 sps:$4 sm:$0xff]   ;;  %v1427_v14 = vld [vmem:[#allocation6 + $0x94] ss:$12 sps:$4 sm:$0xff]   ;;  %vm622_vm1 = vcmask 1042434   ;;  %vm624_vm2 = vcmask 1043459  }
  0x2d   :  { %v1430_v16 = vld [vmem:[#allocation6 + $0xac] ss:$12 sps:$4 sm:$0xff]   ;;  %v1432_v17 = vld [vmem:[#allocation6 + $0xa8] ss:$12 sps:$4 sm:$0xff]   ;;  %vm626_vm3 = vcmask 1044484   ;;  %vm628_vm4 = vcmask 1045509  }
  0x2e   :  { %288 = vmatpush1.bf16.msra.mxu0 %v1414_v4  ;;  %v1603_v19 = vld [vmem:[#allocation3 + $0x10] sm:$0xff]   ;;  %v1606_v20 = vld [vmem:[#allocation3 + $0x18] sm:$0xff]   ;;  %vm630_vm5 = vcmask 1046534   ;;  %vm632_vm6 = vcmask 1047559   ;;  %vm635_vm7 = vcmask 64512   ;;  %s1560_s1 = smov [#allocation8]  }
  0x2f   :  { %289 = vmatprep.subr.bf16.mxu0 %v1415_v5  ;;  %s1325_s8 = sshll.u32 %s1560_s1, 4  ;;  %s1326_s8 = int_to_ptr.vmem [resolvable:$true] %s1325_s8 }
  0x30   :  { %s1525_s9 = scalar_lea.vmem %s1326_s8, 128  ;;  %p1530_p3 = scmp.lt.s32.totalorder %s1326_s8, %s1326_s8 }
  0x31   :  { %p1526_p2 = scmp.ne.s32.totalorder %s1326_s8, %s1525_s9  ;;  %p1531_p4 = scmp.lt.s32.totalorder %s1525_s9, %s1525_s9 }
  0x32   :  { %290 = vmatpush1.bf16.msra.mxu0 %v1417_v6 }
  0x33   :  { %291 = vmatprep.subr.bf16.mxu0 %v1418_v7  ;;  %p1532_p5 = por %p1531_p4, %p1530_p3 }
  0x35   :  { %p1533_p6 = pnand %p1532_p5, %p1526_p2 }
  0x36   :  { %292 = vmatpush1.bf16.msra.mxu0 %v1420_v8 }
  0x37   :  { %293 = vmatprep.subr.bf16.mxu0 %v1421_v10 }
  0x3a   :  { %294 = vmatpush1.bf16.msra.mxu0 %v1423_v11 }
  0x3b   :  { %295 = vmatprep.subr.bf16.mxu0 %v1424_v12 }
  0x3e   :  { %296 = vmatpush1.bf16.msra.mxu0 %v1426_v13 }
  0x3f   :  { %297 = vmatprep.subr.bf16.mxu0 %v1427_v14 }
  0x42   :  { %298 = vmatpush1.bf16.msra.mxu0 %v1429_v15 }
  0x43   :  { %299 = vmatprep.subr.bf16.mxu0 %v1430_v16 }
  0x46   :  { %300 = vmatpush1.bf16.msra.mxu0 %v1432_v17 }
  0x49   :  { %318 = vmatmul.mubr.bf16.vlgmr.msra.gmra.mrb[0].mxu0 %v1433_v9 }
  0x4a   :  { %327 = vmatprep.mubr.bf16.mxu0 %v1559_v0 }
  0x51   :  { %328 = vmatmul.mubr.bf16.gmra.mrb[4].mxu0 %v1600_v18 }
  0x52   :  { %337 = vmatprep.mubr.bf16.mxu0 %v1559_v0 }
  0x59   :  { %338 = vmatmul.mubr.bf16.gmra.mrb[8].mxu0 %v1603_v19 }
  0x5a   :  { %347 = vmatprep.mubr.bf16.mxu0 %v1559_v0 }
  0x61   :  { %348 = vmatmul.mubr.bf16.gmra.mrb[12].mxu0 %v1606_v20 }
 0x11c   :  { %v319_v21 = vpop.f32.mrb[0].mxu0 }
 0x11d   :  { %v498_v22 = vrot.slane %v319_v21, 4  ;;  %v1609_v23 = vpop.f32.mrb[1].mxu0 }
 0x11e   :  { %v323_v24 = vpop.f32.mrb[2].mxu0 }
 0x11f   :  { %v499_v25 = vadd.f32 %v498_v22, %v319_v21  ;;  %v504_v26 = vrot.slane %v323_v24, 4  ;;  %v1611_v27 = vpop.f32.mrb[3].mxu0 }
 0x121   :  { %v500_v28 = vrot.slane %v499_v25, 2  ;;  %v505_v29 = vadd.f32 %v504_v26, %v323_v24 }
 0x123   :  { %v506_v30 = vrot.slane %v505_v29, 2  ;;  %v501_v31 = vadd.f32 %v500_v28, %v499_v25 }
 0x124   :  { %v329_v32 = vpop.f32.mrb[4].mxu0 }
 0x125   :  { %v507_v33 = vadd.f32 %v506_v30, %v505_v29  ;;  %v510_v34 = vrot.slane %v329_v32, 4  ;;  %v1613_v35 = vpop.f32.mrb[5].mxu0  ;;  %v502_v36 = vrot.slane %v501_v31, 1 }
 0x126   :  { %v333_v37 = vpop.f32.mrb[6].mxu0 }
 0x127   :  { %v511_v38 = vadd.f32 %v510_v34, %v329_v32  ;;  %v516_v39 = vrot.slane %v333_v37, 4  ;;  %v1615_v40 = vpop.f32.mrb[7].mxu0  ;;  %v503_v41 = vadd.f32 %v502_v36, %v501_v31  ;;  %v508_v42 = vrot.slane %v507_v33, 1 }
 0x129   :  { %v512_v43 = vrot.slane %v511_v38, 2  ;;  %v517_v44 = vadd.f32 %v516_v39, %v333_v37  ;;  %v1617_v45 = vmul.f32 0.125, %v503_v41  ;;  %v509_v46 = vadd.f32 %v508_v42, %v507_v33 }
 0x12b   :  { %v518_v47 = vrot.slane %v517_v44, 2  ;;  %v554_v48 = vmul.f32 %v1617_v45, %v319_v21  ;;  %v1620_v49 = vmul.f32 0.125, %v509_v46  ;;  %v513_v50 = vadd.f32 %v512_v43, %v511_v38 }
 0x12c   :  { %v339_v51 = vpop.f32.mrb[8].mxu0 }
 0x12d   :  { %v519_v52 = vadd.f32 %v518_v47, %v517_v44  ;;  %v522_v53 = vrot.slane %v339_v51, 4  ;;  %562 = vadd.xlane.f32.xlu0 %v554_v48  ;;  %v1622_v54 = vpop.f32.mrb[9].mxu0  ;;  %v514_v55 = vrot.slane %v513_v50, 1  ;;  %v555_v57 = vmul.f32 %v1620_v49, %v323_v24 }
 0x12e   :  { %v343_v56 = vpop.f32.mrb[10].mxu0  ;;  %v586_v44 = vlaneseq }
 0x12f   :  { %v523_v58 = vadd.f32 %v522_v53, %v339_v51  ;;  %v528_v59 = vrot.slane %v343_v56, 4  ;;  %v1625_v60 = vpop.f32.mrb[11].mxu0  ;;  %v515_v61 = vadd.f32 %v514_v55, %v513_v50  ;;  %v520_v62 = vrot.slane %v519_v52, 1 }
 0x130   :  { %v587_v48 = vand.u32 127, %v586_v44  ;;  %v589_v50 = vshrl.u32 %v586_v44, 7 }
 0x131   :  { %v524_v63 = vrot.slane %v523_v58, 2  ;;  %v529_v0 = vadd.f32 %v528_v59, %v343_v56  ;;  %564 = vadd.xlane.f32.xlu0 %v555_v57  ;;  %v1627_v1 = vmul.f32 0.125, %v515_v61  ;;  %v521_v2 = vadd.f32 %v520_v62, %v519_v52 }
 0x132   :  { %v1649_v52 = vsub.s32 %v587_v48, %v589_v50 }
 0x133   :  { %v525_v3 = vadd.f32 %v524_v63, %v523_v58  ;;  %v530_v4 = vrot.slane %v529_v0, 2  ;;  %v556_v5 = vmul.f32 %v1627_v1, %v329_v32  ;;  %v1630_v6 = vmul.f32 0.125, %v521_v2 }
 0x134   :  { %v349_v7 = vpop.f32.mrb[12].mxu0 }
 0x135   :  { %v531_v8 = vadd.f32 %v530_v4, %v529_v0  ;;  %v534_v9 = vrot.slane %v349_v7, 4  ;;  %566 = vadd.xlane.f32.xlu1 %v556_v5  ;;  %v1632_v10 = vpop.f32.mrb[13].mxu0  ;;  %v526_v11 = vrot.slane %v525_v3, 1  ;;  %v557_v13 = vmul.f32 %v1630_v6, %v333_v37 }
 0x136   :  { %v353_v12 = vpop.f32.mrb[14].mxu0 }
 0x137   :  { %v535_v14 = vadd.f32 %v534_v9, %v349_v7  ;;  %v540_v15 = vrot.slane %v353_v12, 4  ;;  %v1635_v16 = vpop.f32.mrb[15].mxu0  ;;  %v527_v17 = vadd.f32 %v526_v11, %v525_v3  ;;  %v532_v21 = vrot.slane %v531_v8, 1 }
 0x139   :  { %v536_v22 = vrot.slane %v535_v14, 2  ;;  %v541_v24 = vadd.f32 %v540_v15, %v353_v12  ;;  %568 = vadd.xlane.f32.xlu1 %v557_v13  ;;  %v1637_v25 = vmul.f32 0.125, %v527_v17  ;;  %v533_v26 = vadd.f32 %v532_v21, %v531_v8 }
 0x13a   :  { %v1667_v15 = vsub.s32 0, %v589_v50  ;;  %v1669_v17 = vsub.s32 1, %v589_v50  ;;  %v1671_v21 = vsub.s32 2, %v589_v50 }
 0x13b   :  { %v537_v28 = vadd.f32 %v536_v22, %v535_v14  ;;  %v542_v29 = vrot.slane %v541_v24, 2  ;;  %v558_v30 = vmul.f32 %v1637_v25, %v339_v51  ;;  %v1640_v31 = vmul.f32 0.125, %v533_v26 }
 0x13c   :  { %v1673_v22 = vsub.s32 3, %v589_v50 }
 0x13d   :  { %v543_v32 = vadd.f32 %v542_v29, %v541_v24  ;;  %570 = vadd.xlane.f32.xlu0 %v558_v30  ;;  %v559_v33 = vmul.f32 %v1640_v31, %v343_v56  ;;  %v538_v34 = vrot.slane %v537_v28, 1  ;;  %v1678_v30 = vsub.s32 4, %v589_v50 }
 0x13f   :  { %572 = vadd.xlane.f32.xlu1 %v559_v33  ;;  %v539_v36 = vadd.f32 %v538_v34, %v537_v28  ;;  %v544_v37 = vrot.slane %v543_v32, 1 }
 0x141   :  { %v1643_v38 = vmul.f32 0.125, %v539_v36  ;;  %v545_v39 = vadd.f32 %v544_v37, %v543_v32 }
 0x143   :  { %v560_v41 = vmul.f32 %v1643_v38, %v349_v7  ;;  %v1646_v42 = vmul.f32 0.125, %v545_v39 }
 0x145   :  { %574 = vadd.xlane.f32.xlu0 %v560_v41  ;;  %v561_v43 = vmul.f32 %v1646_v42, %v353_v12  ;;  %v1681_v41 = vsub.s32 5, %v589_v50 }
 0x147   :  { %576 = vadd.xlane.f32.xlu1 %v561_v43 }
 0x1ba   :  { %v563_v46 = vpop.xlane.xlu0 %562 }
 0x1bb   :  { %v591_v58 = vrot.slane %v563_v46, %v1649_v52 }
 0x1be   :  { %v565_v51 = vpop.xlane.xlu0 %564 }
 0x1bf   :  { %v595_v55 = vrot.slane %v565_v51, %v1649_v52 }
 0x1c1   :  { %v621_v63 = vsel %vm620_vm0, %v595_v55, %v591_v58  ;;  %v1684_v55 = vsub.s32 6, %v589_v50 }
 0x1c2   :  { %v567_v47 = vpop.xlane.xlu1 %566 }
 0x1c3   :  { %v599_v57 = vrot.slane %v567_v47, %v1649_v52 }
 0x1c5   :  { %v623_v0 = vsel %vm622_vm1, %v599_v57, %v621_v63 }
 0x1c6   :  { %v569_v53 = vpop.xlane.xlu1 %568 }
 0x1c7   :  { %v603_v59 = vrot.slane %v569_v53, %v1649_v52 }
 0x1c9   :  { %v625_v2 = vsel %vm624_vm2, %v603_v59, %v623_v0 }
 0x1ca   :  { %v571_v56 = vpop.xlane.xlu0 %570 }
 0x1cb   :  { %v607_v61 = vrot.slane %v571_v56, %v1649_v52 }
 0x1cc   :  { %v573_v62 = vpop.xlane.xlu1 %572 }
 0x1cd   :  { %v611_v3 = vrot.slane %v573_v62, %v1649_v52  ;;  %v627_v4 = vsel %vm626_vm3, %v607_v61, %v625_v2 }
 0x1cf   :  { %v629_v9 = vsel %vm628_vm4, %v611_v3, %v627_v4 }
 0x1d2   :  { %v575_v5 = vpop.xlane.xlu0 %574 }
 0x1d3   :  { %v615_v7 = vrot.slane %v575_v5, %v1649_v52 }
 0x1d4   :  { %v577_v8 = vpop.xlane.xlu1 %576 }
 0x1d5   :  { %v619_v11 = vrot.slane %v577_v8, %v1649_v52  ;;  %v631_v12 = vsel %vm630_vm5, %v615_v7, %v629_v9 }
 0x1d7   :  { %v633_v13 = vsel %vm632_vm6, %v619_v11, %v631_v12 }
 0x1d8   :  { %v636_v14 = vsel %vm635_vm7, %v633_v13, -inf }
 0x1d9   :  { %637 = vmax.xlane.f32.xlu0 %v636_v14 }
 0x266   :  { %v638_v24 = vpop.xlane.xlu0 %637 }
 0x267   :  { %v643_v26 = vrot.slane %v638_v24, %v1667_v15  ;;  %v647_v28 = vrot.slane %v638_v24, %v1669_v17  ;;  %v651_v29 = vrot.slane %v638_v24, %v1671_v21  ;;  %v655_v32 = vrot.slane %v638_v24, %v1673_v22 }
 0x268   :  { %v659_v43 = vrot.slane %v638_v24, %v1678_v30  ;;  %v663_v57 = vrot.slane %v638_v24, %v1681_v41 }
 0x269   :  { %v680_v33 = vsub.f32 %v563_v46, %v643_v26  ;;  %v681_v34 = vsub.f32 %v565_v51, %v647_v28  ;;  %v682_v36 = vsub.f32 %v567_v47, %v651_v29  ;;  %v683_v44 = vsub.f32 %v569_v53, %v655_v32 }
 0x26a   :  { %v684_v58 = vsub.f32 %v571_v56, %v659_v43  ;;  %v1687_v46 = vsub.s32 7, %v589_v50  ;;  %v667_v47 = vrot.slane %v638_v24, %v1684_v55  ;;  %v685_v51 = vsub.f32 %v573_v62, %v663_v57 }
 0x26b   :  { %v688_v37 = vmul.f32 1.442695, %v680_v33  ;;  %v690_v39 = vmul.f32 1.442695, %v681_v34  ;;  %v692_v48 = vmul.f32 1.442695, %v682_v36 }
 0x26c   :  { %v694_v59 = vmul.f32 1.442695, %v683_v44  ;;  %v696_v61 = vmul.f32 1.442695, %v684_v58  ;;  %v671_v53 = vrot.slane %v638_v24, %v1687_v46  ;;  %v686_v2 = vsub.f32 %v575_v5, %v667_v47 }
 0x26d   :  { %1445 = vpow2.f32 %v688_v37  ;;  %v698_v3 = vmul.f32 1.442695, %v685_v51 }
 0x26e   :  { %1447 = vpow2.f32 %v690_v39  ;;  %v687_v56 = vsub.f32 %v577_v8, %v671_v53  ;;  %v700_v50 = vmul.f32 1.442695, %v686_v2 }
 0x26f   :  { %1449 = vpow2.f32 %v692_v48 }
 0x270   :  { %1451 = vpow2.f32 %v694_v59  ;;  %v702_v62 = vmul.f32 1.442695, %v687_v56 }
 0x271   :  { %1453 = vpow2.f32 %v696_v61 }
 0x272   :  { %1455 = vpow2.f32 %v698_v3 }
 0x273   :  { %1457 = vpow2.f32 %v700_v50 }
 0x274   :  { %1459 = vpow2.f32 %v702_v62 }
 0x277   :  { %v1446_v63 = vpop.eup %1445 }
 0x278   :  { %v1448_v0 = vpop.eup %1447  ;;  %713 = vperm.xlu1 %1407, %v1446_v63  }
 0x279   :  { %716 = vperm.xlu0 %1408, %v1448_v0   ;;  %v1450_v4 = vpop.eup %1449 }
 0x27a   :  { %v1452_v7 = vpop.eup %1451 }
 0x27b   :  { %v1454_v9 = vpop.eup %1453 }
 0x27c   :  { %719 = vperm.xlu1 %1407, %v1450_v4   ;;  %v1456_v11 = vpop.eup %1455 }
 0x27d   :  { %v1458_v12 = vpop.eup %1457 }
 0x27e   :  { %v1460_v5 = vpop.eup %1459 }
 0x280   :  { %722 = vperm.xlu1 %1407, %v1452_v7  }
 0x284   :  { %725 = vperm.xlu1 %1407, %v1454_v9  }
 0x288   :  { %728 = vperm.xlu1 %1407, %v1456_v11  }
 0x28c   :  { %731 = vperm.xlu1 %1407, %v1458_v12  }
 0x290   :  { %734 = vperm.xlu1 %1407, %v1460_v5  }
 0x2f7   :  { %v714_v13 = vpop.permute.xlu1 %713 }
 0x2f8   :  { %v717_v8 = vpop.permute.xlu0 %716  ;;  %v739_v32 = vrot.slane %v714_v13, %v1649_v52 }
 0x2f9   :  { %v743_v29 = vrot.slane %v717_v8, %v1649_v52 }
 0x2fb   :  { %v720_v14 = vpop.permute.xlu1 %719  ;;  %v768_v39 = vsel %vm620_vm0, %v743_v29, %v739_v32 }
 0x2fc   :  { %v747_v33 = vrot.slane %v720_v14, %v1649_v52 }
 0x2fe   :  { %v769_v44 = vsel %vm622_vm1, %v747_v33, %v768_v39 }
 0x2ff   :  { %v723_v24 = vpop.permute.xlu1 %722 }
 0x300   :  { %v751_v34 = vrot.slane %v723_v24, %v1649_v52 }
 0x302   :  { %v770_v57 = vsel %vm624_vm2, %v751_v34, %v769_v44 }
 0x303   :  { %v726_v26 = vpop.permute.xlu1 %725 }
 0x304   :  { %v755_v36 = vrot.slane %v726_v26, %v1649_v52 }
 0x306   :  { %v771_v58 = vsel %vm626_vm3, %v755_v36, %v770_v57 }
 0x307   :  { %v729_v28 = vpop.permute.xlu1 %728 }
 0x308   :  { %v759_v43 = vrot.slane %v729_v28, %v1649_v52 }
 0x30a   :  { %v772_v47 = vsel %vm628_vm4, %v759_v43, %v771_v58 }
 0x30b   :  { %v732_v37 = vpop.permute.xlu1 %731 }
 0x30c   :  { %v763_v48 = vrot.slane %v732_v37, %v1649_v52 }
 0x30e   :  { %v773_v61 = vsel %vm630_vm5, %v763_v48, %v772_v47 }
 0x30f   :  { %v735_v59 = vpop.permute.xlu1 %734 }
 0x310   :  { %v767_v51 = vrot.slane %v735_v59, %v1649_v52 }
 0x312   :  { %v774_v53 = vsel %vm632_vm6, %v767_v51, %v773_v61 }
 0x313   :  { %v776_v2 = vsel %vm635_vm7, %v774_v53, 0.0 }
 0x314   :  { %777 = vadd.xlane.f32.xlu1 %v776_v2 }
 0x3a1   :  { %v778_v3 = vpop.xlane.xlu1 %777 }
 0x3a2   :  { %1461 = vrcp.f32 %v778_v3 }
 0x3ac   :  { %v1462_v56 = vpop.eup %1461 }
 0x3ad   :  { %v784_v50 = vrot.slane %v1462_v56, %v1667_v15  ;;  %v788_v13 = vrot.slane %v1462_v56, %v1669_v17  ;;  %v792_v24 = vrot.slane %v1462_v56, %v1671_v21  ;;  %v796_v8 = vrot.slane %v1462_v56, %v1673_v22 }
 0x3ae   :  { %v800_v29 = vrot.slane %v1462_v56, %v1678_v30  ;;  %v804_v33 = vrot.slane %v1462_v56, %v1681_v41  ;;  %v808_v34 = vrot.slane %v1462_v56, %v1684_v55  ;;  %v812_v36 = vrot.slane %v1462_v56, %v1687_v46 }
 0x3af   :  { %v821_v62 = vmul.f32 %v1446_v63, %v784_v50  ;;  %v822_v14 = vmul.f32 %v1448_v0, %v788_v13  ;;  %v823_v26 = vmul.f32 %v1450_v4, %v792_v24  ;;  %v824_v28 = vmul.f32 %v1452_v7, %v796_v8 }
 0x3b0   :  { %v825_v32 = vmul.f32 %v1454_v9, %v800_v29  ;;  %v826_v63 = vmul.f32 %v1456_v11, %v804_v33  ;;  %v827_v0 = vmul.f32 %v1458_v12, %v808_v34  ;;  %v828_v4 = vmul.f32 %v1460_v5, %v812_v36 }
 0x3b1   :  { %831 = vperm.xlu0 %1408, %v821_v62  }
 0x3b5   :  { %836 = vperm.xlu0 %1408, %v822_v14  }
 0x3b9   :  { %841 = vperm.xlu0 %1408, %v823_v26  }
 0x3bd   :  { %846 = vperm.xlu0 %1408, %v824_v28  }
 0x3c1   :  { %851 = vperm.xlu0 %1408, %v825_v32  }
 0x3c5   :  { %856 = vperm.xlu0 %1408, %v826_v63  }
 0x3c9   :  { %861 = vperm.xlu0 %1408, %v827_v0  }
 0x3cd   :  { %866 = vperm.xlu0 %1408, %v828_v4  }
 0x430   :  { %v832_v37 = vpop.permute.xlu0 %831 }
 0x431   :  { %v869_v7 = vmul.f32 %v832_v37, %v1609_v23 }
 0x433   :  { %v877_v39 = vrot.slane %v869_v7, 4 }
 0x434   :  { %v837_v43 = vpop.permute.xlu0 %836 }
 0x435   :  { %v878_v44 = vadd.f32 %v877_v39, %v869_v7  ;;  %v870_v9 = vmul.f32 %v837_v43, %v1611_v27 }
 0x437   :  { %v879_v48 = vrot.slane %v878_v44, 2  ;;  %v883_v57 = vrot.slane %v870_v9, 4 }
 0x438   :  { %v842_v11 = vpop.permute.xlu0 %841 }
 0x439   :  { %v880_v58 = vadd.f32 %v879_v48, %v878_v44  ;;  %v884_v59 = vadd.f32 %v883_v57, %v870_v9  ;;  %v871_v12 = vmul.f32 %v842_v11, %v1613_v35 }
 0x43b   :  { %v881_v47 = vrot.slane %v880_v58, 1  ;;  %v885_v51 = vrot.slane %v884_v59, 2  ;;  %v889_v61 = vrot.slane %v871_v12, 4 }
 0x43c   :  { %v847_v5 = vpop.permute.xlu0 %846 }
 0x43d   :  { %v886_v53 = vadd.f32 %v885_v51, %v884_v59  ;;  %v890_v2 = vadd.f32 %v889_v61, %v871_v12  ;;  %v872_v3 = vmul.f32 %v847_v5, %v1615_v40  ;;  %v882_v56 = vadd.f32 %v881_v47, %v880_v58 }
 0x43f   :  { %v887_v50 = vrot.slane %v886_v53, 1  ;;  %v891_v62 = vrot.slane %v890_v2, 2  ;;  %v895_v13 = vrot.slane %v872_v3, 4  ;;  %v1720_v14 = vadd.f32 %v882_v56, %v1617_v45 }
 0x440   :  { %v852_v24 = vpop.permute.xlu0 %851 }
 0x441   :  { %v892_v26 = vadd.f32 %v891_v62, %v890_v2  ;;  %v896_v8 = vadd.f32 %v895_v13, %v872_v3  ;;  %v873_v28 = vmul.f32 %v852_v24, %v1622_v54  ;;  %v933_v29 = vmul.f32 %v1720_v14, %v1609_v23 }
 0x442   :  { %v888_v32 = vadd.f32 %v887_v50, %v886_v53 }
 0x443   :  { %v893_v33 = vrot.slane %v892_v26, 1  ;;  %v897_v63 = vrot.slane %v896_v8, 2  ;;  %v901_v34 = vrot.slane %v873_v28, 4  ;;  %941 = vadd.xlane.f32.xlu1 %v933_v29 }
 0x444   :  { %v857_v0 = vpop.permute.xlu0 %856  ;;  %v1726_v36 = vadd.f32 %v888_v32, %v1620_v49 }
 0x445   :  { %v898_v4 = vadd.f32 %v897_v63, %v896_v8  ;;  %v902_v45 = vadd.f32 %v901_v34, %v873_v28  ;;  %v874_v37 = vmul.f32 %v857_v0, %v1625_v60  ;;  %v894_v7 = vadd.f32 %v893_v33, %v892_v26 }
 0x446   :  { %v934_v39 = vmul.f32 %v1726_v36, %v1611_v27 }
 0x447   :  { %v899_v43 = vrot.slane %v898_v4, 1  ;;  %v903_v44 = vrot.slane %v902_v45, 2  ;;  %v907_v23 = vrot.slane %v874_v37, 4  ;;  %v1732_v9 = vadd.f32 %v894_v7, %v1627_v1 }
 0x448   :  { %943 = vadd.xlane.f32.xlu0 %v934_v39  ;;  %v862_v48 = vpop.permute.xlu0 %861 }
 0x449   :  { %v904_v57 = vadd.f32 %v903_v44, %v902_v45  ;;  %v908_v11 = vadd.f32 %v907_v23, %v874_v37  ;;  %v875_v49 = vmul.f32 %v862_v48, %v1632_v10  ;;  %v935_v58 = vmul.f32 %v1732_v9, %v1613_v35 }
 0x44a   :  { %v900_v59 = vadd.f32 %v899_v43, %v898_v4 }
 0x44b   :  { %v905_v12 = vrot.slane %v904_v57, 1  ;;  %v909_v47 = vrot.slane %v908_v11, 2  ;;  %v913_v51 = vrot.slane %v875_v49, 4  ;;  %945 = vadd.xlane.f32.xlu1 %v935_v58 }
 0x44c   :  { %v867_v27 = vpop.permute.xlu0 %866  ;;  %v1738_v61 = vadd.f32 %v900_v59, %v1630_v6 }
 0x44d   :  { %v910_v1 = vadd.f32 %v909_v47, %v908_v11  ;;  %v914_v5 = vadd.f32 %v913_v51, %v875_v49  ;;  %v876_v53 = vmul.f32 %v867_v27, %v1635_v16  ;;  %v906_v2 = vadd.f32 %v905_v12, %v904_v57 }
 0x44e   :  { %v936_v3 = vmul.f32 %v1738_v61, %v1615_v40 }
 0x44f   :  { %v911_v56 = vrot.slane %v910_v1, 1  ;;  %v915_v50 = vrot.slane %v914_v5, 2  ;;  %v919_v35 = vrot.slane %v876_v53, 4  ;;  %v1744_v62 = vadd.f32 %v906_v2, %v1637_v25 }
 0x450   :  { %947 = vadd.xlane.f32.xlu1 %v936_v3 }
 0x451   :  { %v916_v13 = vadd.f32 %v915_v50, %v914_v5  ;;  %v920_v24 = vadd.f32 %v919_v35, %v876_v53  ;;  %v937_v6 = vmul.f32 %v1744_v62, %v1622_v54  ;;  %v912_v26 = vadd.f32 %v911_v56, %v910_v1 }
 0x453   :  { %v917_v8 = vrot.slane %v916_v13, 1  ;;  %v921_v28 = vrot.slane %v920_v24, 2  ;;  %v1749_v29 = vadd.f32 %v912_v26, %v1640_v31 }
 0x454   :  { %949 = vadd.xlane.f32.xlu1 %v937_v6 }
 0x455   :  { %v922_v40 = vadd.f32 %v921_v28, %v920_v24  ;;  %v938_v32 = vmul.f32 %v1749_v29, %v1625_v60  ;;  %v918_v33 = vadd.f32 %v917_v8, %v916_v13 }
 0x457   :  { %v923_v25 = vrot.slane %v922_v40, 1  ;;  %v1754_v63 = vadd.f32 %v918_v33, %v1643_v38 }
 0x458   :  { %951 = vadd.xlane.f32.xlu1 %v938_v32 }
 0x459   :  { %v939_v54 = vmul.f32 %v1754_v63, %v1632_v10  ;;  %v924_v34 = vadd.f32 %v923_v25, %v922_v40 }
 0x45b   :  { %v1759_v0 = vadd.f32 %v924_v34, %v1646_v42 }
 0x45c   :  { %953 = vadd.xlane.f32.xlu1 %v939_v54 }
 0x45d   :  { %v940_v31 = vmul.f32 %v1759_v0, %v1635_v16 }
 0x460   :  { %955 = vadd.xlane.f32.xlu1 %v940_v31 }
 0x4d0   :  { %v942_v4 = vpop.xlane.xlu1 %941 }
 0x4d1   :  { %v968_v10 = vrot.slane %v942_v4, %v1649_v52 }
 0x4d5   :  { %v944_v7 = vpop.xlane.xlu0 %943 }
 0x4d6   :  { %v972_v39 = vrot.slane %v944_v7, %v1649_v52 }
 0x4d8   :  { %v946_v60 = vpop.xlane.xlu1 %945  ;;  %v997_v16 = vsel %vm620_vm0, %v972_v39, %v968_v10 }
 0x4d9   :  { %v976_v43 = vrot.slane %v946_v60, %v1649_v52 }
 0x4db   :  { %v998_v57 = vsel %vm622_vm1, %v976_v43, %v997_v16 }
 0x4dd   :  { %v948_v45 = vpop.xlane.xlu1 %947 }
 0x4de   :  { %v980_v42 = vrot.slane %v948_v45, %v1649_v52 }
 0x4e0   :  { %v999_v49 = vsel %vm624_vm2, %v980_v42, %v998_v57  ;;  %v1438_v57 = vld [vmem:[#allocation6 + $0x20] ss:$12 sps:$4 sm:$0xff]  }
 0x4e1   :  { %v950_v37 = vpop.xlane.xlu1 %949 }
 0x4e2   :  { %v984_v44 = vrot.slane %v950_v37, %v1649_v52 }
 0x4e4   :  { %v1000_v58 = vsel %vm626_vm3, %v984_v44, %v999_v49  ;;  %v1440_v49 = vld [vmem:[#allocation6 + $0x50] ss:$12 sps:$4 sm:$0xff]  }
 0x4e5   :  { %v952_v38 = vpop.xlane.xlu1 %951 }
 0x4e6   :  { %v988_v48 = vrot.slane %v952_v38, %v1649_v52 }
 0x4e8   :  { %v1001_v47 = vsel %vm628_vm4, %v988_v48, %v1000_v58  ;;  %v1437_v48 = vld [vmem:[#allocation6 + $0x8] ss:$12 sps:$4 sm:$0xff]  }
 0x4e9   :  { %v954_v23 = vpop.xlane.xlu1 %953  ;;  %1375 = vmatprep.subr.bf16.mxu1 %v1437_v48  ;;  %v1441_v58 = vld [vmem:[#allocation6 + $0x68] ss:$12 sps:$4 sm:$0xff]  }
 0x4ea   :  { %v992_v11 = vrot.slane %v954_v23, %v1649_v52  ;;  %1376 = vmatpush3.bf16.msra.mxu1 %v1437_v48 }
 0x4eb   :  { %1377 = vmatprep.subr.bf16.mxu1 %v1438_v57 }
 0x4ec   :  { %v1002_v51 = vsel %vm630_vm5, %v992_v11, %v1001_v47  ;;  %v1439_v11 = vld [vmem:[#allocation6 + $0x38] ss:$12 sps:$4 sm:$0xff]   ;;  %v1444_v47 = vld [vmem:[#allocation6 + $0xb0] ss:$12 sps:$4 sm:$0xff]  }
 0x4ed   :  { %v956_v59 = vpop.xlane.xlu1 %955 }
 0x4ee   :  { %v996_v12 = vrot.slane %v956_v59, %v1649_v52  ;;  %1378 = vmatpush3.bf16.msra.mxu1 %v1438_v57 }
 0x4ef   :  { %1379 = vmatprep.subr.bf16.mxu1 %v1439_v11 }
 0x4f0   :  { %v1003_v27 = vsel %vm632_vm6, %v996_v12, %v1002_v51  ;;  %v1443_v12 = vld [vmem:[#allocation6 + $0x98] ss:$12 sps:$4 sm:$0xff]  }
 0x4f1   :  { %v1005_v1 = vsel %vm635_vm7, %v1003_v27, -inf }
 0x4f2   :  { %1006 = vmax.xlane.f32.xlu1 %v1005_v1  ;;  %1380 = vmatpush3.bf16.msra.mxu1 %v1439_v11 }
 0x4f3   :  { %1381 = vmatprep.subr.bf16.mxu1 %v1440_v49 }
 0x4f6   :  { %1382 = vmatpush3.bf16.msra.mxu1 %v1440_v49 }
 0x4f7   :  { %1383 = vmatprep.subr.bf16.mxu1 %v1441_v58 }
 0x4fa   :  { %1384 = vmatpush3.bf16.msra.mxu1 %v1441_v58 }
 0x57f   :  { %v1007_v5 = vpop.xlane.xlu1 %1006 }
 0x580   :  { %v1012_v53 = vrot.slane %v1007_v5, %v1667_v15  ;;  %v1016_v2 = vrot.slane %v1007_v5, %v1669_v17  ;;  %v1020_v3 = vrot.slane %v1007_v5, %v1671_v21  ;;  %v1028_v56 = vrot.slane %v1007_v5, %v1678_v30 }
 0x581   :  { %v1024_v50 = vrot.slane %v1007_v5, %v1673_v22  ;;  %v1036_v6 = vrot.slane %v1007_v5, %v1684_v55  ;;  %v1032_v40 = vrot.slane %v1007_v5, %v1681_v41  ;;  %v1040_v34 = vrot.slane %v1007_v5, %v1687_v46 }
 0x582   :  { %v1049_v35 = vsub.f32 %v942_v4, %v1012_v53  ;;  %v1050_v13 = vsub.f32 %v944_v7, %v1016_v2  ;;  %v1051_v24 = vsub.f32 %v946_v60, %v1020_v3  ;;  %v1053_v26 = vsub.f32 %v950_v37, %v1028_v56 }
 0x583   :  { %v1052_v32 = vsub.f32 %v948_v45, %v1024_v50  ;;  %v1055_v25 = vsub.f32 %v954_v23, %v1036_v6  ;;  %v1054_v31 = vsub.f32 %v952_v38, %v1032_v40  ;;  %v1056_v7 = vsub.f32 %v956_v59, %v1040_v34  ;;  %v1442_v59 = vld [vmem:[#allocation6 + $0x80] ss:$12 sps:$4 sm:$0xff]  }
 0x584   :  { %v1057_v8 = vmul.f32 1.442695, %v1049_v35  ;;  %v1059_v28 = vmul.f32 1.442695, %v1050_v13  ;;  %v1061_v33 = vmul.f32 1.442695, %v1051_v24  ;;  %1385 = vmatprep.subr.bf16.mxu1 %v1442_v59 }
 0x585   :  { %v1065_v54 = vmul.f32 1.442695, %v1053_v26  ;;  %v1063_v4 = vmul.f32 1.442695, %v1052_v32  ;;  %v1069_v60 = vmul.f32 1.442695, %v1055_v25  ;;  %1386 = vmatpush3.bf16.msra.mxu1 %v1442_v59 }
 0x586   :  { %1463 = vpow2.f32 %v1057_v8  ;;  %v1067_v37 = vmul.f32 1.442695, %v1054_v31  ;;  %v1071_v45 = vmul.f32 1.442695, %v1056_v7  ;;  %1387 = vmatprep.subr.bf16.mxu1 %v1443_v12 }
 0x587   :  { %1465 = vpow2.f32 %v1059_v28 }
 0x588   :  { %1467 = vpow2.f32 %v1061_v33 }
 0x589   :  { %1469 = vpow2.f32 %v1065_v54  ;;  %1388 = vmatpush3.bf16.msra.mxu1 %v1443_v12 }
 0x58a   :  { %1471 = vpow2.f32 %v1063_v4  ;;  %1389 = vmatprep.subr.bf16.mxu1 %v1444_v47 }
 0x58b   :  { %1473 = vpow2.f32 %v1069_v60 }
 0x58c   :  { %1475 = vpow2.f32 %v1067_v37 }
 0x58d   :  { %1477 = vpow2.f32 %v1071_v45  ;;  %1390 = vmatpush3.bf16.msra.mxu1 %v1444_v47 }
 0x590   :  { %v1787_v39 = vpop.eup %1463  ;;  %1392 = vmatmul.mubr.bf16.vlgmr.msra.gmra.mrb[0].mxu1 %v1600_v18 }
 0x591   :  { %v1789_v43 = vpop.eup %1465  ;;  %1082 = vperm.xlu1 %1407, %v1787_v39   ;;  %1395 = vmatprep.mubr.bf16.mxu1 %v1603_v19 }
 0x592   :  { %1085 = vperm.xlu0 %1408, %v1789_v43   ;;  %v1793_v10 = vpop.eup %1467 }
 0x593   :  { %v1795_v38 = vpop.eup %1469 }
 0x594   :  { %v1799_v42 = vpop.eup %1471 }
 0x595   :  { %1088 = vperm.xlu1 %1407, %v1793_v10   ;;  %v1801_v44 = vpop.eup %1473 }
 0x596   :  { %1094 = vperm.xlu0 %1408, %v1795_v38   ;;  %v1805_v23 = vpop.eup %1475 }
 0x597   :  { %v1808_v16 = vpop.eup %1477 }
 0x598   :  { %1396 = vmatmul.mubr.bf16.gmra.mrb[4].mxu1 %v1606_v20 }
 0x599   :  { %1091 = vperm.xlu1 %1407, %v1799_v42  }
 0x59a   :  { %1100 = vperm.xlu0 %1408, %v1801_v44  }
 0x59d   :  { %1097 = vperm.xlu1 %1407, %v1805_v23  }
 0x5a1   :  { %1103 = vperm.xlu1 %1407, %v1808_v16  }
 0x610   :  { %v1083_v51 = vpop.permute.xlu1 %1082 }
 0x611   :  { %v1086_v27 = vpop.permute.xlu0 %1085  ;;  %v1108_v53 = vrot.slane %v1083_v51, %v1649_v52 }
 0x612   :  { %v1112_v5 = vrot.slane %v1086_v27, %v1649_v52 }
 0x614   :  { %v1089_v1 = vpop.permute.xlu1 %1088  ;;  %v1137_v50 = vsel %vm620_vm0, %v1112_v5, %v1108_v53 }
 0x615   :  { %v1116_v2 = vrot.slane %v1089_v1, %v1649_v52  ;;  %v1095_v3 = vpop.permute.xlu0 %1094 }
 0x616   :  { %v1124_v20 = vrot.slane %v1095_v3, %v1649_v52 }
 0x617   :  { %v1138_v18 = vsel %vm622_vm1, %v1116_v2, %v1137_v50 }
 0x618   :  { %v1092_v56 = vpop.permute.xlu1 %1091 }
 0x619   :  { %v1120_v35 = vrot.slane %v1092_v56, %v1649_v52  ;;  %v1101_v24 = vpop.permute.xlu0 %1100 }
 0x61a   :  { %v1132_v28 = vrot.slane %v1101_v24, %v1649_v52 }
 0x61b   :  { %v1139_v19 = vsel %vm624_vm2, %v1120_v35, %v1138_v18 }
 0x61c   :  { %v1098_v13 = vpop.permute.xlu1 %1097  ;;  %v1140_v26 = vsel %vm626_vm3, %v1124_v20, %v1139_v19 }
 0x61d   :  { %v1128_v6 = vrot.slane %v1098_v13, %v1649_v52 }
 0x61f   :  { %v1141_v8 = vsel %vm628_vm4, %v1128_v6, %v1140_v26 }
 0x620   :  { %v1104_v40 = vpop.permute.xlu1 %1103  ;;  %v1142_v33 = vsel %vm630_vm5, %v1132_v28, %v1141_v8 }
 0x621   :  { %v1136_v32 = vrot.slane %v1104_v40, %v1649_v52 }
 0x623   :  { %v1143_v25 = vsel %vm632_vm6, %v1136_v32, %v1142_v33 }
 0x624   :  { %v1145_v54 = vsel %vm635_vm7, %v1143_v25, 0.0 }
 0x625   :  { %1146 = vadd.xlane.f32.xlu0 %v1145_v54 }
 0x663   :  { %v1393_v34 = vpop.f32.mrb[0].mxu1 }
 0x664   :  { %v392_v31 = vpop.f32.mrb[1].mxu1 }
 0x665   :  { %v1394_v49 = vpop.f32.mrb[2].mxu1 }
 0x666   :  { %v395_v59 = vpop.f32.mrb[3].mxu1 }
 0x6b2   :  { %v1147_v4 = vpop.xlane.xlu0 %1146 }
 0x6b3   :  { %1479 = vrcp.f32 %v1147_v4 }
 0x6bd   :  { %v1480_v60 = vpop.eup %1479 }
 0x6be   :  { %v1153_v7 = vrot.slane %v1480_v60, %v1667_v15  ;;  %v1157_v45 = vrot.slane %v1480_v60, %v1669_v17  ;;  %v1161_v48 = vrot.slane %v1480_v60, %v1671_v21  ;;  %v1165_v11 = vrot.slane %v1480_v60, %v1673_v22 }
 0x6bf   :  { %v1169_v15 = vrot.slane %v1480_v60, %v1678_v30  ;;  %v1181_v12 = vrot.slane %v1480_v60, %v1687_v46 }
 0x6c0   :  { %v1190_v37 = vmul.f32 %v1787_v39, %v1153_v7  ;;  %v1191_v52 = vmul.f32 %v1789_v43, %v1157_v45  ;;  %v1192_v57 = vmul.f32 %v1793_v10, %v1161_v48  ;;  %v1193_v58 = vmul.f32 %v1799_v42, %v1165_v11  ;;  %v1397_v10 = vpop.f32.mrb[4].mxu1 }
 0x6c1   :  { %v1194_v17 = vmul.f32 %v1795_v38, %v1169_v15  ;;  %v1173_v39 = vrot.slane %v1480_v60, %v1681_v41  ;;  %v1177_v43 = vrot.slane %v1480_v60, %v1684_v55  ;;  %v408_v42 = vpop.f32.mrb[5].mxu1  ;;  %v1197_v47 = vmul.f32 %v1808_v16, %v1181_v12 }
 0x6c2   :  { %1200 = vperm.xlu1 %1407, %v1190_v37   ;;  %v1398_v30 = vpop.f32.mrb[6].mxu1 }
 0x6c3   :  { %v1195_v21 = vmul.f32 %v1805_v23, %v1173_v39  ;;  %v1196_v22 = vmul.f32 %v1801_v44, %v1177_v43  ;;  %v411_v51 = vpop.f32.mrb[7].mxu1 }
 0x6c6   :  { %1205 = vperm.xlu1 %1407, %v1191_v52  }
 0x6ca   :  { %1210 = vperm.xlu1 %1407, %v1192_v57  }
 0x6ce   :  { %1215 = vperm.xlu1 %1407, %v1193_v58  }
 0x6d2   :  { %1220 = vperm.xlu1 %1407, %v1194_v17  }
 0x6d6   :  { %1225 = vperm.xlu1 %1407, %v1195_v21  }
 0x6da   :  { %1230 = vperm.xlu1 %1407, %v1196_v22  }
 0x6de   :  { %1235 = vperm.xlu1 %1407, %v1197_v47  }
 0x741   :  { %v1201_v38 = vpop.permute.xlu1 %1200 }
 0x742   :  { %v1238_v41 = vmul.f32 %v1201_v38, %v392_v31 }
 0x744   :  { %v1246_v27 = vrot.slane %v1238_v41, 4 }
 0x745   :  { %v1206_v1 = vpop.permute.xlu1 %1205 }
 0x746   :  { %v1247_v23 = vadd.f32 %v1246_v27, %v1238_v41  ;;  %v1239_v5 = vmul.f32 %v1206_v1, %v395_v59 }
 0x748   :  { %v1248_v55 = vrot.slane %v1247_v23, 2  ;;  %v1252_v53 = vrot.slane %v1239_v5, 4 }
 0x749   :  { %v1211_v2 = vpop.permute.xlu1 %1210 }
 0x74a   :  { %v1249_v3 = vadd.f32 %v1248_v55, %v1247_v23  ;;  %v1253_v44 = vadd.f32 %v1252_v53, %v1239_v5  ;;  %v1240_v56 = vmul.f32 %v1393_v34, %v1211_v2 }
 0x74c   :  { %v1250_v46 = vrot.slane %v1249_v3, 1  ;;  %v1254_v50 = vrot.slane %v1253_v44, 2  ;;  %v1258_v35 = vrot.slane %v1240_v56, 4 }
 0x74d   :  { %v1216_v18 = vpop.permute.xlu1 %1215 }
 0x74e   :  { %v1255_v19 = vadd.f32 %v1254_v50, %v1253_v44  ;;  %v1259_v16 = vadd.f32 %v1258_v35, %v1240_v56  ;;  %v1241_v20 = vmul.f32 %v1394_v49, %v1216_v18  ;;  %v1251_v13 = vadd.f32 %v1250_v46, %v1249_v3 }
 0x750   :  { %v1256_v24 = vrot.slane %v1255_v19, 1  ;;  %v1260_v6 = vrot.slane %v1259_v16, 2  ;;  %v1264_v26 = vrot.slane %v1241_v20, 4  ;;  %v1294_v25 = vadd.f32 %v1251_v13, %v1720_v14 }
 0x751   :  { %v1221_v8 = vpop.permute.xlu1 %1220 }
 0x752   :  { %v1257_v28 = vadd.f32 %v1256_v24, %v1255_v19  ;;  %v1261_v40 = vadd.f32 %v1260_v6, %v1259_v16  ;;  %v1265_v32 = vadd.f32 %v1264_v26, %v1241_v20  ;;  %v1242_v33 = vmul.f32 %v1221_v8, %v408_v42 }
 0x754   :  { %v1295_v54 = vadd.f32 %v1257_v28, %v1726_v36  ;;  %v1262_v34 = vrot.slane %v1261_v40, 1  ;;  %v1266_v31 = vrot.slane %v1265_v32, 2  ;;  %v1270_v4 = vrot.slane %v1242_v33, 4 }
 0x755   :  { %v1226_v60 = vpop.permute.xlu1 %1225 }
 0x756   :  { %v1310_v7 = vsel %vm620_vm0, %v1295_v54, %v1294_v25  ;;  %v1263_v37 = vadd.f32 %v1262_v34, %v1261_v40  ;;  %v1267_v45 = vadd.f32 %v1266_v31, %v1265_v32  ;;  %v1271_v52 = vadd.f32 %v1270_v4, %v1242_v33 }
 0x757   :  { %v1243_v48 = vmul.f32 %v1226_v60, %v411_v51 }
 0x758   :  { %v1296_v57 = vadd.f32 %v1263_v37, %v1732_v9  ;;  %v1268_v11 = vrot.slane %v1267_v45, 1  ;;  %v1272_v49 = vrot.slane %v1271_v52, 2 }
 0x759   :  { %v1276_v58 = vrot.slane %v1243_v48, 4  ;;  %v1231_v15 = vpop.permute.xlu1 %1230 }
 0x75a   :  { %v1311_v14 = vsel %vm622_vm1, %v1296_v57, %v1310_v7  ;;  %v1269_v59 = vadd.f32 %v1268_v11, %v1267_v45  ;;  %v1273_v36 = vadd.f32 %v1272_v49, %v1271_v52  ;;  %v1244_v17 = vmul.f32 %v1397_v10, %v1231_v15 }
 0x75b   :  { %v1277_v39 = vadd.f32 %v1276_v58, %v1243_v48 }
 0x75c   :  { %v1297_v21 = vadd.f32 %v1269_v59, %v1738_v61  ;;  %v1274_v43 = vrot.slane %v1273_v36, 1  ;;  %v1282_v22 = vrot.slane %v1244_v17, 4 }
 0x75d   :  { %v1278_v12 = vrot.slane %v1277_v39, 2  ;;  %v1236_v42 = vpop.permute.xlu1 %1235 }
 0x75e   :  { %v1275_v47 = vadd.f32 %v1274_v43, %v1273_v36  ;;  %v1283_v51 = vadd.f32 %v1282_v22, %v1244_v17  ;;  %v1245_v38 = vmul.f32 %v1398_v30, %v1236_v42  ;;  %v1312_v9 = vsel %vm624_vm2, %v1297_v21, %v1311_v14 }
 0x75f   :  { %v1279_v41 = vadd.f32 %v1278_v12, %v1277_v39 }
 0x760   :  { %v1298_v27 = vadd.f32 %v1275_v47, %v1744_v62  ;;  %v1284_v1 = vrot.slane %v1283_v51, 2  ;;  %v1288_v23 = vrot.slane %v1245_v38, 4 }
 0x761   :  { %v1280_v5 = vrot.slane %v1279_v41, 1 }
 0x762   :  { %v1285_v55 = vadd.f32 %v1284_v1, %v1283_v51  ;;  %v1289_v10 = vadd.f32 %v1288_v23, %v1245_v38  ;;  %v1313_v53 = vsel %vm626_vm3, %v1298_v27, %v1312_v9 }
 0x763   :  { %v1281_v61 = vadd.f32 %v1280_v5, %v1279_v41 }
 0x764   :  { %v1286_v2 = vrot.slane %v1285_v55, 1  ;;  %v1290_v3 = vrot.slane %v1289_v10, 2 }
 0x765   :  { %v1299_v44 = vadd.f32 %v1281_v61, %v1749_v29 }
 0x766   :  { %v1287_v56 = vadd.f32 %v1286_v2, %v1285_v55  ;;  %v1291_v46 = vadd.f32 %v1290_v3, %v1289_v10 }
 0x767   :  { %v1314_v30 = vsel %vm628_vm4, %v1299_v44, %v1313_v53 }
 0x768   :  { %v1300_v50 = vadd.f32 %v1287_v56, %v1754_v63  ;;  %v1292_v35 = vrot.slane %v1291_v46, 1 }
 0x76a   :  { %v1293_v62 = vadd.f32 %v1292_v35, %v1291_v46  ;;  %v1315_v18 = vsel %vm630_vm5, %v1300_v50, %v1314_v30 }
 0x76c   :  { %v1301_v19 = vadd.f32 %v1293_v62, %v1759_v0 }
 0x76e   :  { %v1316_v16 = vsel %vm632_vm6, %v1301_v19, %v1315_v18 }
 0x76f   :  { %1318 = vst [vmem:[#allocation8] sm:$0xff] %v1316_v16 }
 0x770   :  { %1536 = shalt.err (!%p1533_p6)
}
 0x771   :  { %s1537_s12 = scalar_lea.hbm %s1875_s2, 128 }
 0x772   :  { %p1538_p7 = scmp.ne.s32.totalorder %s1875_s2, %s1537_s12  ;;  %p1541_p8 = scmp.lt.u32.totalorder %s1537_s12, %s1875_s2 }
 0x774   :  { %p1543_p9 = pnand %p1541_p8, %p1538_p7 }
 0x776   :  { %1546 = shalt.err (!%p1543_p9)
}
 0x777   :  { %1328 = dma.vmem_to_hbm [thread:$0]  %s1326_s8, 128, %s1875_s2, [#allocation5]  }
 0x778   :  { %1551 = dma.done.wait [#allocation5], 128  }
 0x779   :  { %1552 = vsyncadd [#allocation5], 4294967168 }
 0x77a   :  { %1332 = vsyncpa [#allocation4], 1 }
 0x77b   :  { %1333 = vsyncpa [#allocation7], 1 }
 0x77c   :  { %1334 = vsyncpa [#allocation5], 1 }

</bundles_post_ra>
